<compile_context>
chip_gen: v7x
topology: tpu7x:2x2x1
jax: 0.10.0
libtpu: 0.0.40
codegen_flags: <defaults>
</compile_context>

<pallas_src>
import jax
import jax.numpy as jnp
from jax.experimental import pallas as pl
from jax.experimental.pallas import tpu as pltpu


def build_prompt_base(token_prefix, token_suffix, n_ctx):
    """One-time assembly of the constant part of the prompts.

    Returns (n_cls, 1 + n_ctx + S, D) with prefix/suffix already in their final
    positions; the n_ctx context rows are placeholders the forward overwrites.
    """
    n_cls, one, d = token_prefix.shape
    assert one == 1
    dtype = token_prefix.dtype
    ctx_slab = jnp.zeros((n_cls, n_ctx, d), dtype=dtype)
    return jnp.concatenate(
        [token_prefix, ctx_slab, token_suffix.astype(dtype)], axis=1)


def _scatter_kernel(n_cls, n_ctx, c_tile, num_steps):
    """Write-only DMA scatter of the shared ctx rows into the aliased base."""

    def kernel(ctx_ref, base_hbm, out_hbm, slab_ref, sem_ref):
        del base_hbm  # same HBM buffer as out_hbm (aliased); never read here.
        i = pl.program_id(0)

        # One-time broadcast of ctx into the (c_tile, n_ctx, D) DMA source
        # slab.  Scratch persists across grid steps; grid axis is "arbitrary"
        # (sequential) so step 0 always runs first.  Per-class stores keep the
        # temp at (n_ctx, D) instead of materializing the full broadcast.
        @pl.when(i == 0)
        def _():
            ctx_v = ctx_ref[...].astype(slab_ref.dtype)

            def fill(c, carry):
                slab_ref[c] = ctx_v
                return carry

            jax.lax.fori_loop(0, c_tile, fill, 0)

        def start_dma(step, slot):
            # Clamp so the last (possibly partial) class tile re-covers earlier
            # classes instead of running past n_cls.  Overlapping writes carry
            # identical ctx data, so this is safe, keeps the DMA shape static,
            # and never touches the preserved suffix rows of the aliased base.
            first = jnp.minimum(step * c_tile, n_cls - c_tile)
            pltpu.make_async_copy(
                slab_ref,
                out_hbm.at[pl.ds(first, c_tile), pl.ds(1, n_ctx), :],
                sem_ref.at[slot],
            ).start()

        def wait_dma(slot):
            # The wait only needs a descriptor of the same shape (the shape,
            # not the address, sizes the semaphore decrement).
            pltpu.make_async_copy(
                slab_ref,
                out_hbm.at[pl.ds(0, c_tile), pl.ds(1, n_ctx), :],
                sem_ref.at[slot],
            ).wait()

        slot = i % 2

        # Keep two DMAs in flight: before reusing a semaphore slot, wait for
        # the DMA issued two grid steps earlier on the same slot.
        if num_steps > 2:
            @pl.when(i >= 2)
            def _():
                wait_dma(slot)

        start_dma(i, slot)

        # Drain all outstanding DMAs on the final step.
        @pl.when(i == num_steps - 1)
        def _():
            if num_steps >= 2:
                wait_dma(1 - slot)   # DMA issued at step num_steps - 2
            wait_dma(slot)           # DMA issued at this step

    return kernel


def prompt_learner_forward(ctx, prompt_base, *, class_tile=None):
    """prompts = cat([prefix, ctx.expand(n_cls, ...), suffix], dim=-2).

    `prompt_base` comes from build_prompt_base and is aliased to the output
    (donate it at the call site so the alias holds and XLA does not copy the
    full buffer).  Only the n_ctx ctx rows per class are written each forward,
    via manual strided DMAs from a VMEM slab; prefix/suffix rows are preserved
    in place and never read.
    """
    n_cls, seq_len, d = prompt_base.shape
    n_ctx = ctx.shape[0]
    assert ctx.shape == (n_ctx, d), (ctx.shape, (n_ctx, d))
    # Guard against OOB ctx rows (VMEM/HBM refs have no runtime bounds check).
    assert seq_len >= 1 + n_ctx, (seq_len, n_ctx)
    dtype = prompt_base.dtype                       # explicit dtype contract
    itemsize = jnp.dtype(dtype).itemsize

    # Class tile: ~4 MiB DMA source slab (single-buffered scratch, comfortably
    # inside v7x's 64 MiB VMEM and trivially inside v5e/v6e's 128 MiB) so each
    # grid step issues one large descriptor and the ~0.35 us per-step overhead
    # is amortized.
    if class_tile is None:
        c = max(1, (4 << 20) // (n_ctx * d * itemsize))
    else:
        c = int(class_tile)
    c = max(1, min(c, n_cls))
    num_steps = pl.cdiv(n_cls, c)
    grid = (num_steps,)

    slab_bytes = c * n_ctx * d * itemsize
    # Write-only traffic model: ctx read once + n_cls*n_ctx*D rows written.
    bytes_accessed = (n_cls * n_ctx * d + n_ctx * d) * itemsize

    return pl.pallas_call(
        _scatter_kernel(n_cls, n_ctx, c, num_steps),
        out_shape=jax.ShapeDtypeStruct((n_cls, seq_len, d), dtype),
        grid=grid,
        in_specs=[
            # shared learnable context -> VMEM (same tiny block every step)
            pl.BlockSpec((n_ctx, d), lambda i: (0, 0)),
            # pre-assembled prompt buffer: raw HBM, aliased to output, unread
            pl.BlockSpec(memory_space=pl.ANY),
        ],
        # output stays in HBM; written only by the manual ctx-row DMAs
        out_specs=pl.BlockSpec(memory_space=pl.ANY),
        scratch_shapes=[
            pltpu.VMEM((c, n_ctx, d), dtype),        # broadcast ctx slab
            pltpu.SemaphoreType.DMA((2,)),           # 2 DMAs in flight
        ],
        # The prompt buffer is reused as the output; prefix/suffix rows are
        # preserved in place (never read or written).
        input_output_aliases={1: 0},
        compiler_params=pltpu.CompilerParams(
            # Sequential grid: the step-0 slab fill and cross-step DMA
            # pipelining require ordered steps; the kernel is HBM-write-bound,
            # which one TC's DMA engine already saturates.
            dimension_semantics=("arbitrary",),
            vmem_limit_bytes=max(32 << 20, slab_bytes + (4 << 20)),
        ),
        cost_estimate=pl.CostEstimate(
            flops=0, transcendentals=0, bytes_accessed=bytes_accessed),
    )(ctx.astype(dtype), prompt_base)


if __name__ == "__main__":
    # Small, module-consistent shapes.
    n_cls = 16       # number of class names
    n_ctx = 8        # number of learnable context tokens
    ctx_dim = 128    # ln_final.weight.shape[0] (lane-friendly)
    seq_len = 32     # tokenized prompt length (small stand-in for CLIP's 77)
    dtype = jnp.float32

    key = jax.random.PRNGKey(0)
    k_ctx, k_emb = jax.random.split(key)

    # nn.init.normal_(ctx_vectors, std=0.02)
    ctx = (0.02 * jax.random.normal(k_ctx, (n_ctx, ctx_dim))).astype(dtype)

    # Synthetic stand-in for clip_model.token_embedding(tokenized_prompts):
    # prefix = embedding[:, :1, :], suffix = embedding[:, 1+n_ctx:, :]
    embedding = jax.random.normal(k_emb, (n_cls, seq_len, ctx_dim)).astype(dtype)
    token_prefix = embedding[:, :1, :]
    token_suffix = embedding[:, 1 + n_ctx:, :]

    # Pure-JAX reference of the PyTorch forward ('end' position, not learned_cls).
    ctx_expanded = jnp.broadcast_to(ctx[None], (n_cls, n_ctx, ctx_dim))
    ref = jnp.concatenate([token_prefix, ctx_expanded, token_suffix], axis=1)

    # Per-step forward: donate the prompt buffer so the output alias is truly
    # in-place (a non-donated base would force XLA to copy the whole buffer).
    forward = jax.jit(prompt_learner_forward, donate_argnums=(1,),
                      static_argnames=("class_tile",))

    # One-time constant-buffer assembly (init-time, like register_buffer).
    prompt_base = jax.block_until_ready(
        build_prompt_base(token_prefix, token_suffix, n_ctx))
    prompts = jax.block_until_ready(forward(ctx, prompt_base))
    assert prompts.shape == (n_cls, seq_len, ctx_dim)
    assert prompts.dtype == dtype
    assert jnp.allclose(prompts, ref), "mismatch vs reference (single tile)"

    # Partial-last-tile path: class_tile=5 does not divide n_cls=16, exercising
    # the clamped final DMA and the multi-step 2-deep DMA pipelining.
    prompt_base2 = jax.block_until_ready(
        build_prompt_base(token_prefix, token_suffix, n_ctx))
    prompts2 = jax.block_until_ready(forward(ctx, prompt_base2, class_tile=5))
    assert jnp.allclose(prompts2, ref), "mismatch vs reference (partial tile)"

    print("KERNEL_OK")
</pallas_src>

<mosaic_0001>
module attributes {stable_mosaic.version = 11 : i64} {
  func.func @kernel(%arg0: i32, %arg1: memref<8x128xf32, #tpu.memory_space<vmem>>, %arg2: memref<16x32x128xf32, #tpu.memory_space<any>>, %arg3: memref<16x32x128xf32, #tpu.memory_space<any>>, %arg4: memref<16x8x128xf32, #tpu.memory_space<vmem>>, %arg5: memref<2x!tpu.dma_semaphore, #tpu.memory_space<semaphore_mem>>) attributes {dimension_semantics = [#tpu.dimension_semantics<arbitrary>], iteration_bounds = array<i64: 1>, scalar_prefetch = 0 : i64, scratch_operands = 2 : i64, tpu.core_type = #tpu.core_type<tc>, window_params = [{pipeline_mode = #tpu.pipeline_mode<synchronous>, transform_indices = @transform_0, window_bounds = array<i64: 8, 128>}, {}, {}]} {
    %c0_i32 = arith.constant 0 : i32
    %0 = arith.cmpi eq, %arg0, %c0_i32 : i32
    %1 = arith.extui %0 : i1 to i32
    %c0_i32_0 = arith.constant 0 : i32
    %2 = arith.cmpi ne, %1, %c0_i32_0 : i32
    scf.if %2 {
      %c0 = arith.constant 0 : index
      %c0_10 = arith.constant 0 : index
      %21 = vector.load %arg1[%c0, %c0_10] : memref<8x128xf32, #tpu.memory_space<vmem>>, vector<8x128xf32>
      %c0_i32_11 = arith.constant 0 : i32
      %c16_i32_12 = arith.constant 16 : i32
      %22 = arith.addi %c0_i32_11, %c16_i32_12 : i32
      %c1_i32_13 = arith.constant 1 : i32
      scf.for %arg6 = %c0_i32_11 to %22 step %c1_i32_13  : i32 {
        %23 = arith.index_cast %arg6 : i32 to index
        %c0_15 = arith.constant 0 : index
        %c0_16 = arith.constant 0 : index
        %24 = vector.load %arg4[%23, %c0_15, %c0_16] : memref<16x8x128xf32, #tpu.memory_space<vmem>>, vector<1x8x128xf32>
        %25 = vector.shape_cast %24 : vector<1x8x128xf32> to vector<8x128xf32>
        %26 = vector.shape_cast %21 : vector<8x128xf32> to vector<1x8x128xf32>
        tpu.vector_store %arg4[%23, %c0_15, %c0_16], %26 {strides = array<i32>} : memref<16x8x128xf32, #tpu.memory_space<vmem>>, vector<1x8x128xf32>,
      }
      %c16_i32_14 = arith.constant 16 : i32
    } else {
    }
    %c2_i32 = arith.constant 2 : i32
    %c0_i32_1 = arith.constant 0 : i32
    %3 = arith.cmpi eq, %c2_i32, %c0_i32_1 : i32
    %c1_i32 = arith.constant 1 : i32
    %4 = arith.select %3, %c1_i32, %c2_i32 : i32
    %5 = arith.remsi %arg0, %4 : i32
    %c0_i32_2 = arith.constant 0 : i32
    %6 = arith.cmpi ne, %5, %c0_i32_2 : i32
    %c0_i32_3 = arith.constant 0 : i32
    %7 = arith.cmpi slt, %5, %c0_i32_3 : i32
    %c0_i32_4 = arith.constant 0 : i32
    %8 = arith.cmpi slt, %4, %c0_i32_4 : i32
    %9 = arith.xori %7, %8 : i1
    %10 = arith.andi %9, %6 : i1
    %11 = arith.addi %5, %4 : i32
    %12 = arith.select %10, %11, %5 : i32
    %c16_i32 = arith.constant 16 : i32
    %13 = arith.muli %arg0, %c16_i32 : i32
    %c0_i32_5 = arith.constant 0 : i32
    %14 = arith.minsi %13, %c0_i32_5 : i32
    %c1_i32_6 = arith.constant 1 : i32
    %c0_i32_7 = arith.constant 0 : i32
    %15 = tpu.memref_slice %arg3[%14, %c1_i32_6, %c0_i32_7] : memref<16x32x128xf32, #tpu.memory_space<any>> -> memref<16x8x128xf32, #tpu.memory_space<any>>
    %16 = tpu.memref_slice %arg5[%12] : memref<2x!tpu.dma_semaphore, #tpu.memory_space<semaphore_mem>> -> memref<1x!tpu.dma_semaphore, #tpu.memory_space<semaphore_mem>>
    %17 = tpu.memref_squeeze %16 : memref<1x!tpu.dma_semaphore, #tpu.memory_space<semaphore_mem>> -> memref<!tpu.dma_semaphore, #tpu.memory_space<semaphore_mem>>
    tpu.enqueue_dma source(%arg4 : memref<16x8x128xf32, #tpu.memory_space<vmem>>) target(%15 : memref<16x8x128xf32, #tpu.memory_space<any>>) target_semaphore(%17 : memref<!tpu.dma_semaphore, #tpu.memory_space<semaphore_mem>>)
    %c0_i32_8 = arith.constant 0 : i32
    %18 = arith.cmpi eq, %arg0, %c0_i32_8 : i32
    %19 = arith.extui %18 : i1 to i32
    %c0_i32_9 = arith.constant 0 : i32
    %20 = arith.cmpi ne, %19, %c0_i32_9 : i32
    scf.if %20 {
      %c0_i32_10 = arith.constant 0 : i32
      %c1_i32_11 = arith.constant 1 : i32
      %c0_i32_12 = arith.constant 0 : i32
      %21 = tpu.memref_slice %arg3[%c0_i32_10, %c1_i32_11, %c0_i32_12] : memref<16x32x128xf32, #tpu.memory_space<any>> -> memref<16x8x128xf32, #tpu.memory_space<any>>
      %22 = tpu.memref_slice %arg5[%12] : memref<2x!tpu.dma_semaphore, #tpu.memory_space<semaphore_mem>> -> memref<1x!tpu.dma_semaphore, #tpu.memory_space<semaphore_mem>>
      %23 = tpu.memref_squeeze %22 : memref<1x!tpu.dma_semaphore, #tpu.memory_space<semaphore_mem>> -> memref<!tpu.dma_semaphore, #tpu.memory_space<semaphore_mem>>
      tpu.wait_dma2 semaphore(%23 : memref<!tpu.dma_semaphore, #tpu.memory_space<semaphore_mem>>) src(%arg4 : memref<16x8x128xf32, #tpu.memory_space<vmem>>) dst(%21 : memref<16x8x128xf32, #tpu.memory_space<any>>)
    } else {
    }
    return
  }
  func.func @transform_0(%arg0: i32) -> (i32, i32) {
    %c0_i32 = arith.constant 0 : i32
    %c0_i32_0 = arith.constant 0 : i32
    %c0_i32_1 = arith.constant 0 : i32
    return %c0_i32, %c0_i32_0 : i32, i32
  }
}

</mosaic_0001>

<bundles_post_ra>
// kernel: prompt_learner_forward.1
= control target key start
LH: loop header
LB: loop body
LE: loop exit
PB: predicated region body
PF: predicated region fallthrough
CT: control target
= control target key end

     0   :  { %7 = vsyncpa [#allocation5], 0  ;;  %s164_s9 = smov [#allocation4]   ;;  %s208_s0 = inlined_call_operand.hbm [shape: f32[8,128], index: 0, kind: input, shape index: {}]   ;;  %s209_s1 = inlined_call_operand.hbm [shape: f32[16,32,128], index: 1, kind: input, shape index: {}, may-alias: {1,2}]   ;;  %s210_s2 = inlined_call_operand.hbm [shape: f32[16,32,128], index: 2, kind: output, shape index: {}, may-alias: {1,2}]  }
   0x1   :  { %s14_s10 = sshll.u32 %s164_s9, 4  ;;  %s105_s13 = scalar_lea.hbm %s208_s0, 128  ;;  %s15_s10 = int_to_ptr.vmem [resolvable:$true] %s14_s10 }
   0x2   :  { %p106_p0 = scmp.ne.s32.totalorder %s208_s0, %s105_s13  ;;  %p109_p1 = scmp.lt.u32.totalorder %s105_s13, %s208_s0 }
   0x4   :  { %p111_p2 = pnand %p109_p1, %p106_p0 }
   0x6   :  { %114 = shalt.err (!%p111_p2)
}
   0x7   :  { %s115_s1 = scalar_lea.vmem %s15_s10, 128  ;;  %p120_p4 = scmp.lt.s32.totalorder %s15_s10, %s15_s10 }
   0x8   :  { %p116_p3 = scmp.ne.s32.totalorder %s15_s10, %s115_s1  ;;  %p121_p5 = scmp.lt.s32.totalorder %s115_s1, %s115_s1 }
   0xa   :  { %p122_p6 = por %p121_p5, %p120_p4 }
   0xc   :  { %p123_p7 = pnand %p122_p6, %p116_p3 }
   0xe   :  { %126 = shalt.err (!%p123_p7)
}
   0xf   :  { %17 = dma.hbm_to_vmem [thread:$0]  %s208_s0, 128, %s15_s10, [#allocation5]  }
  0x10   :  { %156 = dma.done.wait [#allocation5], 128  }
  0x11   :  { %157 = vsyncadd [#allocation5], 4294967168  ;;  %v25_v0 = vld [vmem:[#allocation4] sm:$0xff]  ;;  %s160_s20 = smov 0  }
  0x12 LB: > { %s89_s21 = sshll.u32 %s162_s20, 3  ;;  %s31_s20 = sadd.s32 1, %s162_s20   ;;  %s162_s20 = sphi %s160_s20, %s31_s20  }
  0x13   : > { %s33_s22 = scalar_lea.vmem [#allocation2], %s89_s21  ;;  %p28_p8 = scmp.ge.s32.totalorder %s31_s20, 16  }
  0x14   : > { %34 = vst [vmem:[%s33_s22] sm:$0xff] %v25_v0  ;;  %s82_s25 = scalar_lea.hbm (%p28_p8), %s210_s2, 16  ;;  %s165_s26 = smov (%p28_p8), [#allocation2]  }
  0x15   :  { %30 = sbr.rel (!%p28_p8) target bundleno = 18 (0x12), region = 39  ;;  %s52_s0 = sshll.u32 (%p28_p8), %s165_s26, 4  ;;  %s53_s0 = int_to_ptr.vmem [resolvable:$true] %s52_s0 }
  0x16   :  { %s127_s27 = scalar_lea.vmem (%p28_p8), %s53_s0, 2048  ;;  %p132_p10 = scmp.lt.s32.totalorder (%p28_p8), %s53_s0, %s53_s0 }
  0x17   :  { %p128_p9 = scmp.ne.s32.totalorder (%p28_p8), %s53_s0, %s127_s27  ;;  %p133_p11 = scmp.lt.s32.totalorder (%p28_p8), %s127_s27, %s127_s27 }
  0x19   :  { %p134_p12 = por (%p28_p8), %p133_p11, %p132_p10 }
  0x1b   :  { %p135_p13 = pnand (%p28_p8), %p134_p12, %p128_p9 }
  0x1d   :  { %138 = shalt.err (!%p135_p13)  }
  0x1e   :  { %s151_s30 = scalar_lea.hbm %s210_s2, 2064  ;;  %s141_s5 = scalar_lea.hbm %s210_s2, 8192 }
  0x1f   :  { %p140_p0 = scmp.ne.s32.totalorder %s82_s25, %s151_s30  ;;  %p142_p1 = scmp.lt.u32.totalorder %s82_s25, %s210_s2 }
  0x20   :  { %p143_p2 = scmp.lt.u32.totalorder %s141_s5, %s151_s30  ;;  %p145_p4 = scmp.lt.u32.totalorder %s151_s30, %s82_s25 }
  0x22   :  { %p144_p3 = por %p143_p2, %p142_p1 }
  0x24   :  { %p146_p5 = por %p145_p4, %p144_p3 }
  0x26   :  { %p147_p6 = pnand %p146_p5, %p140_p0 }
  0x28   :  { %150 = shalt.err (!%p147_p6)  }
  0x29   :  { %s166_s8 = smov 128   ;;  %s167_s9 = smov 512  }
  0x2a   :  { %s168_s10 = smov 8  }
  0x2b   :  { %55 = dma.vmem_to_hbm [thread:$0]  %s53_s0, 2048, %s82_s25, [#allocation3], %s166_s8, %s167_s9, %s168_s10 }
  0x2c   :  { %158 = dma.done.wait [#allocation3], 2048 }
  0x2d   :  { %159 = vsyncadd [#allocation3], 4294965248 }
  0x2e   :  { %63 = vsyncpa [#allocation5], 1 }
  0x2f   :  { %64 = vsyncmov [#allocation3] }
  0x32   :  { %s65_s11 = vpop.sfrf %64 }
  0x33   :  { %p90_p7 = scmp.ne.s32.totalorder %s65_s11, 0 }
  0x35   :  { %69 = shalt.err (%p90_p7)  }
  0x36   :  { %71 = vsyncmov [#allocation3 + $0x1] }
  0x39   :  { %s72_s12 = vpop.sfrf %71 }
  0x3a   :  { %p91_p8 = scmp.ne.s32.totalorder %s72_s12, 0 }
  0x3c   :  { %76 = shalt.err (%p91_p8)  }

</bundles_post_ra>
